<compile_context>
chip_gen: v6e
topology: v6e:2x2x1
jax: 0.10.0
libtpu: 0.0.40
codegen_flags: <defaults>
</compile_context>

<pallas_src>
import math

import jax
import jax.numpy as jnp
from jax.experimental import pallas as pl
from jax.experimental.pallas import tpu as pltpu

HIDDEN = 64
MLP_DIM = 256
NUM_HEADS = 2
HEAD_DIM = HIDDEN // NUM_HEADS
LN_EPS = 1e-6


def _normalize(v):
    """LayerNorm without affine (affine is folded into downstream weights)."""
    mu = jnp.mean(v, axis=-1, keepdims=True)
    var = jnp.mean((v - mu) ** 2, axis=-1, keepdims=True)
    return (v - mu) * jax.lax.rsqrt(var + LN_EPS)


def block_kernel(x_ref, qx_ref,
                 wqv_ref, bqv_ref, wk_ref, bk_ref,
                 wo_ref, bo_ref,
                 w1_ref, b1_ref, w2_ref, b2_ref,
                 o_ref):
    bt, S, H = x_ref.shape
    N = bt * S

    # Flatten the (Bt, S, H) tile to (Bt*S, H) rows for LN / projections / MLP.
    x = x_ref[...].astype(jnp.float32).reshape(N, H)
    qx = qx_ref[...].astype(jnp.float32).reshape(N, H)

    xn = _normalize(x)      # feeds K   (ln1 affine folded into wk/bk)
    qxn = _normalize(qx)    # feeds Q,V (ln1 affine folded into wqv/bqv)

    # Fused Q|V projection: one lane-dense (N, 128) output.  ln1 affine and the
    # 1/sqrt(head_dim) score scale are pre-folded host-side.  bf16 operands, f32 acc.
    qv = jnp.dot(qxn.astype(jnp.bfloat16), wqv_ref[...],
                 preferred_element_type=jnp.float32) + bqv_ref[...]
    k = jnp.dot(xn.astype(jnp.bfloat16), wk_ref[...],
                preferred_element_type=jnp.float32) + bk_ref[...]
    q = qv[:, :H]   # static lane slices (free)
    v = qv[:, H:]

    q3 = q.reshape(bt, S, H).astype(jnp.bfloat16)
    k3 = k.reshape(bt, S, H).astype(jnp.bfloat16)
    v3 = v.reshape(bt, S, H).astype(jnp.bfloat16)

    wo = wo_ref[...]
    attn = None
    for h in range(NUM_HEADS):  # static unroll over the 2 heads, batched over Bt
        sl = slice(h * HEAD_DIM, (h + 1) * HEAD_DIM)
        s = jnp.einsum('bqd,bkd->bqk', q3[..., sl], k3[..., sl],
                       preferred_element_type=jnp.float32)
        s = s - jnp.max(s, axis=-1, keepdims=True)
        p = jnp.exp(s)
        p = p * pl.reciprocal(jnp.sum(p, axis=-1, keepdims=True), approx=True)
        ctx = jnp.einsum('bqk,bkd->bqd', p.astype(jnp.bfloat16), v3[..., sl],
                         preferred_element_type=jnp.float32)
        # Fold this head's context straight through its rows of the output
        # projection -> no cross-lane concatenation of heads.
        part = jnp.dot(ctx.reshape(N, HEAD_DIM).astype(jnp.bfloat16),
                       wo[sl, :], preferred_element_type=jnp.float32)
        attn = part if attn is None else attn + part

    x1 = attn + bo_ref[...] + x  # attention output + residual

    # ffn_norm (affine folded into w1/b1) + MLP with exact erf GELU
    # (matches torch.nn.functional.gelu default).
    xn2 = _normalize(x1)
    h1 = jnp.dot(xn2.astype(jnp.bfloat16), w1_ref[...],
                 preferred_element_type=jnp.float32) + b1_ref[...]
    h1 = 0.5 * h1 * (1.0 + jax.lax.erf(h1 * jnp.float32(1.0 / math.sqrt(2.0))))
    h2 = jnp.dot(h1.astype(jnp.bfloat16), w2_ref[...],
                 preferred_element_type=jnp.float32) + b2_ref[...]

    o_ref[...] = (h2 + x1).reshape(bt, S, H).astype(o_ref.dtype)


def _choose_batch_tile(B, S):
    # Cap rows per grid step (live f32 intermediates are ~6 KB/row, so 512 rows
    # stays far under v7x's 64 MiB VMEM even with double buffering), and keep
    # >= 2 grid steps when B >= 2 so both v7x TensorCores get work.
    max_rows = 512
    bt = max(1, min(B, max_rows // max(S, 1)))
    if B >= 2:
        bt = min(bt, -(-B // 2))       # ceil(B / 2)
    while B % bt:                      # keep the grid exact
        bt -= 1
    return bt


@jax.jit
def block_forward(x, qx, params):
    B, S, H = x.shape
    assert H == HIDDEN
    Bt = _choose_batch_tile(B, S)

    # ---- Host-side weight folding (traced once under jit, tiny cost) ----
    # LayerNorm affine folds exactly into the following linear layer:
    #   (norm(x)*g + b) @ W + c  ==  norm(x) @ (g[:,None]*W) + (b @ W + c)
    scale = jnp.float32(1.0 / math.sqrt(HEAD_DIM))   # folded into Q
    g1 = params["ln1_w"].reshape(-1)[:, None]
    b1n = params["ln1_b"].reshape(1, -1)
    g2 = params["ln2_w"].reshape(-1)[:, None]
    b2n = params["ln2_b"].reshape(1, -1)

    wq_f = (g1 * params["wq"]) * scale
    bq_f = (b1n @ params["wq"]) * scale + params["bq"]
    wv_f = g1 * params["wv"]
    bv_f = b1n @ params["wv"] + params["bv"]
    wk_f = g1 * params["wk"]
    bk_f = b1n @ params["wk"] + params["bk"]
    w1_f = g2 * params["w1"]
    b1_f = b2n @ params["w1"] + params["b1"]

    # Fuse Q|V into one lane-dense 128-wide projection; cast matmul weights to
    # bf16 once here (not per grid step).
    wqv = jnp.concatenate([wq_f, wv_f], axis=1).astype(jnp.bfloat16)
    bqv = jnp.concatenate([bq_f, bv_f], axis=1).astype(jnp.float32)

    packed = [
        wqv, bqv,
        wk_f.astype(jnp.bfloat16), bk_f.astype(jnp.float32),
        params["wo"].astype(jnp.bfloat16), params["bo"].astype(jnp.float32),
        w1_f.astype(jnp.bfloat16), b1_f.astype(jnp.float32),
        params["w2"].astype(jnp.bfloat16), params["b2"].astype(jnp.float32),
    ]

    seq_spec = pl.BlockSpec((Bt, S, H), lambda b: (b, 0, 0))

    def w_spec(arr):
        nd = arr.ndim
        # Constant index_map => Pallas keeps these weight blocks resident in
        # VMEM across grid steps (no per-step re-DMA).
        return pl.BlockSpec(arr.shape, lambda b, _nd=nd: (0,) * _nd)

    return pl.pallas_call(
        block_kernel,
        out_shape=jax.ShapeDtypeStruct((B, S, H), x.dtype),
        grid_spec=pltpu.PrefetchScalarGridSpec(
            num_scalar_prefetch=0,
            grid=(B // Bt,),
            in_specs=[seq_spec, seq_spec] + [w_spec(a) for a in packed],
            out_specs=seq_spec,
        ),
        compiler_params=pltpu.CompilerParams(
            dimension_semantics=("parallel",)),
    )(x, qx, *packed)


def init_params(key):
    ks = jax.random.split(key, 12)

    def lin(k, fan_in, fan_out, scale=None):
        if scale is None:
            scale = 1.0 / math.sqrt(fan_in)
        return scale * jax.random.normal(k, (fan_in, fan_out), jnp.float32)

    return {
        "ln1_w": jnp.ones((1, HIDDEN), jnp.float32),
        "ln1_b": jnp.zeros((1, HIDDEN), jnp.float32),
        "wq": lin(ks[0], HIDDEN, HIDDEN),
        "bq": 0.01 * jax.random.normal(ks[1], (1, HIDDEN), jnp.float32),
        "wk": lin(ks[2], HIDDEN, HIDDEN),
        "bk": 0.01 * jax.random.normal(ks[9], (1, HIDDEN), jnp.float32),
        "wv": lin(ks[3], HIDDEN, HIDDEN),
        "bv": 0.01 * jax.random.normal(ks[10], (1, HIDDEN), jnp.float32),
        "wo": lin(ks[4], HIDDEN, HIDDEN),
        "bo": 0.01 * jax.random.normal(ks[11], (1, HIDDEN), jnp.float32),
        "ln2_w": jnp.ones((1, HIDDEN), jnp.float32),
        "ln2_b": jnp.zeros((1, HIDDEN), jnp.float32),
        "w1": lin(ks[5], HIDDEN, MLP_DIM, scale=math.sqrt(2.0 / (HIDDEN + MLP_DIM))),
        "b1": 1e-6 * jax.random.normal(ks[6], (1, MLP_DIM), jnp.float32),
        "w2": lin(ks[7], MLP_DIM, HIDDEN, scale=math.sqrt(2.0 / (HIDDEN + MLP_DIM))),
        "b2": 1e-6 * jax.random.normal(ks[8], (1, HIDDEN), jnp.float32),
    }


def block_reference(x, qx, p):
    """Pure-JAX f32 reference mirroring the PyTorch Block.forward."""
    hi = jax.lax.Precision.HIGHEST

    def ln(v, w, b):
        mu = jnp.mean(v, -1, keepdims=True)
        var = jnp.mean((v - mu) ** 2, -1, keepdims=True)
        return (v - mu) / jnp.sqrt(var + LN_EPS) * w + b

    h = x
    xn = ln(x, p["ln1_w"], p["ln1_b"])
    qxn = ln(qx, p["ln1_w"], p["ln1_b"])
    q = jnp.matmul(qxn, p["wq"], precision=hi) + p["bq"]
    k = jnp.matmul(xn, p["wk"], precision=hi) + p["bk"]
    v = jnp.matmul(qxn, p["wv"], precision=hi) + p["bv"]
    B, S, _ = x.shape

    def split(t):  # (B,S,H) -> (B,heads,S,head_dim)
        return t.reshape(B, S, NUM_HEADS, HEAD_DIM).transpose(0, 2, 1, 3)

    qh, kh, vh = split(q), split(k), split(v)
    s = jnp.einsum("bhqd,bhkd->bhqk", qh, kh, precision=hi) / math.sqrt(HEAD_DIM)
    pmat = jax.nn.softmax(s, axis=-1)
    ctx = jnp.einsum("bhqk,bhkd->bhqd", pmat, vh, precision=hi)
    ctx = ctx.transpose(0, 2, 1, 3).reshape(B, S, HIDDEN)
    attn_out = jnp.matmul(ctx, p["wo"], precision=hi) + p["bo"]
    x = attn_out + h
    h = x
    xn2 = ln(x, p["ln2_w"], p["ln2_b"])
    h1 = jnp.matmul(xn2, p["w1"], precision=hi) + p["b1"]
    h1 = jax.nn.gelu(h1, approximate=False)
    h2 = jnp.matmul(h1, p["w2"], precision=hi) + p["b2"]
    return h2 + h


if __name__ == "__main__":
    key = jax.random.PRNGKey(0)
    kx, kq, kp = jax.random.split(key, 3)
    B, S = 2, 8
    x = jax.random.normal(kx, (B, S, HIDDEN), jnp.float32)
    qx = jax.random.normal(kq, (B, S, HIDDEN), jnp.float32)
    params = init_params(kp)

    out = jax.block_until_ready(block_forward(x, qx, params))
    ref = block_reference(x, qx, params)

    assert out.shape == (B, S, HIDDEN)
    # Kernel uses bf16 MXU operands (f32 accumulation) vs. the f32 HIGHEST
    # reference: expect <~1% relative deviation.  Semantic bugs would show O(1)
    # errors, so this tolerance still catches real mistakes.
    assert jnp.allclose(out, ref, atol=5e-2, rtol=5e-2), (
        float(jnp.max(jnp.abs(out - ref))))
    print("KERNEL_OK")
</pallas_src>

<mosaic_0001>
module attributes {stable_mosaic.version = 11 : i64} {
  func.func @block_kernel(%arg0: i32, %arg1: memref<1x8x64xf32, #tpu.memory_space<vmem>>, %arg2: memref<1x8x64xf32, #tpu.memory_space<vmem>>, %arg3: memref<64x128xbf16, #tpu.memory_space<vmem>>, %arg4: memref<1x128xf32, #tpu.memory_space<vmem>>, %arg5: memref<64x64xbf16, #tpu.memory_space<vmem>>, %arg6: memref<1x64xf32, #tpu.memory_space<vmem>>, %arg7: memref<64x64xbf16, #tpu.memory_space<vmem>>, %arg8: memref<1x64xf32, #tpu.memory_space<vmem>>, %arg9: memref<64x256xbf16, #tpu.memory_space<vmem>>, %arg10: memref<1x256xf32, #tpu.memory_space<vmem>>, %arg11: memref<256x64xbf16, #tpu.memory_space<vmem>>, %arg12: memref<1x64xf32, #tpu.memory_space<vmem>>, %arg13: memref<1x8x64xf32, #tpu.memory_space<vmem>>) attributes {dimension_semantics = [#tpu.dimension_semantics<parallel>], iteration_bounds = array<i64: 2>, scalar_prefetch = 0 : i64, scratch_operands = 0 : i64, tpu.core_type = #tpu.core_type<tc>, window_params = [{transform_indices = @transform_0, window_bounds = array<i64: 1, 8, 64>}, {transform_indices = @transform_1, window_bounds = array<i64: 1, 8, 64>}, {pipeline_mode = #tpu.pipeline_mode<synchronous>, transform_indices = @transform_2, window_bounds = array<i64: 64, 128>}, {pipeline_mode = #tpu.pipeline_mode<synchronous>, transform_indices = @transform_3, window_bounds = array<i64: 1, 128>}, {pipeline_mode = #tpu.pipeline_mode<synchronous>, transform_indices = @transform_4, window_bounds = array<i64: 64, 64>}, {pipeline_mode = #tpu.pipeline_mode<synchronous>, transform_indices = @transform_5, window_bounds = array<i64: 1, 64>}, {pipeline_mode = #tpu.pipeline_mode<synchronous>, transform_indices = @transform_6, window_bounds = array<i64: 64, 64>}, {pipeline_mode = #tpu.pipeline_mode<synchronous>, transform_indices = @transform_7, window_bounds = array<i64: 1, 64>}, {pipeline_mode = #tpu.pipeline_mode<synchronous>, transform_indices = @transform_8, window_bounds = array<i64: 64, 256>}, {pipeline_mode = #tpu.pipeline_mode<synchronous>, transform_indices = @transform_9, window_bounds = array<i64: 1, 256>}, {pipeline_mode = #tpu.pipeline_mode<synchronous>, transform_indices = @transform_10, window_bounds = array<i64: 256, 64>}, {pipeline_mode = #tpu.pipeline_mode<synchronous>, transform_indices = @transform_11, window_bounds = array<i64: 1, 64>}, {transform_indices = @transform_12, window_bounds = array<i64: 1, 8, 64>}]} {
    %c0 = arith.constant 0 : index
    %c0_0 = arith.constant 0 : index
    %c0_1 = arith.constant 0 : index
    %0 = vector.load %arg1[%c0, %c0_0, %c0_1] : memref<1x8x64xf32, #tpu.memory_space<vmem>>, vector<1x8x64xf32>
    %1 = vector.shape_cast %0 : vector<1x8x64xf32> to vector<8x64xf32>
    %c0_2 = arith.constant 0 : index
    %c0_3 = arith.constant 0 : index
    %c0_4 = arith.constant 0 : index
    %2 = vector.load %arg2[%c0_2, %c0_3, %c0_4] : memref<1x8x64xf32, #tpu.memory_space<vmem>>, vector<1x8x64xf32>
    %3 = vector.shape_cast %2 : vector<1x8x64xf32> to vector<8x64xf32>
    %cst = arith.constant dense<0.000000e+00> : vector<8xf32>
    %4 = vector.multi_reduction <add>, %1, %cst [1] : vector<8x64xf32> to vector<8xf32>
    %5 = vector.shape_cast %4 : vector<8xf32> to vector<8x1xf32>
    %cst_5 = arith.constant 6.400000e+01 : f32
    %6 = vector.broadcast %cst_5 : f32 to vector<8x1xf32>
    %7 = arith.divf %5, %6 : vector<8x1xf32>
    %8 = vector.broadcast %7 : vector<8x1xf32> to vector<8x64xf32>
    %9 = arith.subf %1, %8 : vector<8x64xf32>
    %10 = arith.mulf %9, %9 : vector<8x64xf32>
    %cst_6 = arith.constant dense<0.000000e+00> : vector<8xf32>
    %11 = vector.multi_reduction <add>, %10, %cst_6 [1] : vector<8x64xf32> to vector<8xf32>
    %12 = vector.shape_cast %11 : vector<8xf32> to vector<8x1xf32>
    %cst_7 = arith.constant 6.400000e+01 : f32
    %13 = vector.broadcast %cst_7 : f32 to vector<8x1xf32>
    %14 = arith.divf %12, %13 : vector<8x1xf32>
    %15 = vector.broadcast %7 : vector<8x1xf32> to vector<8x64xf32>
    %16 = arith.subf %1, %15 : vector<8x64xf32>
    %cst_8 = arith.constant 9.99999997E-7 : f32
    %17 = vector.broadcast %cst_8 : f32 to vector<8x1xf32>
    %18 = arith.addf %14, %17 : vector<8x1xf32>
    %19 = math.rsqrt %18 : vector<8x1xf32>
    %20 = vector.broadcast %19 : vector<8x1xf32> to vector<8x64xf32>
    %21 = arith.mulf %16, %20 : vector<8x64xf32>
    %cst_9 = arith.constant dense<0.000000e+00> : vector<8xf32>
    %22 = vector.multi_reduction <add>, %3, %cst_9 [1] : vector<8x64xf32> to vector<8xf32>
    %23 = vector.shape_cast %22 : vector<8xf32> to vector<8x1xf32>
    %cst_10 = arith.constant 6.400000e+01 : f32
    %24 = vector.broadcast %cst_10 : f32 to vector<8x1xf32>
    %25 = arith.divf %23, %24 : vector<8x1xf32>
    %26 = vector.broadcast %25 : vector<8x1xf32> to vector<8x64xf32>
    %27 = arith.subf %3, %26 : vector<8x64xf32>
    %28 = arith.mulf %27, %27 : vector<8x64xf32>
    %cst_11 = arith.constant dense<0.000000e+00> : vector<8xf32>
    %29 = vector.multi_reduction <add>, %28, %cst_11 [1] : vector<8x64xf32> to vector<8xf32>
    %30 = vector.shape_cast %29 : vector<8xf32> to vector<8x1xf32>
    %cst_12 = arith.constant 6.400000e+01 : f32
    %31 = vector.broadcast %cst_12 : f32 to vector<8x1xf32>
    %32 = arith.divf %30, %31 : vector<8x1xf32>
    %33 = vector.broadcast %25 : vector<8x1xf32> to vector<8x64xf32>
    %34 = arith.subf %3, %33 : vector<8x64xf32>
    %cst_13 = arith.constant 9.99999997E-7 : f32
    %35 = vector.broadcast %cst_13 : f32 to vector<8x1xf32>
    %36 = arith.addf %32, %35 : vector<8x1xf32>
    %37 = math.rsqrt %36 : vector<8x1xf32>
    %38 = vector.broadcast %37 : vector<8x1xf32> to vector<8x64xf32>
    %39 = arith.mulf %34, %38 : vector<8x64xf32>
    %40 = arith.truncf %39 : vector<8x64xf32> to vector<8x64xbf16>
    %c0_14 = arith.constant 0 : index
    %c0_15 = arith.constant 0 : index
    %41 = vector.load %arg3[%c0_14, %c0_15] : memref<64x128xbf16, #tpu.memory_space<vmem>>, vector<64x128xbf16>
    %cst_16 = arith.constant dense<0.000000e+00> : vector<8x128xf32>
    %42 = tpu.matmul %40, %41, %cst_16 {dimension_numbers = #tpu.dot_dimension_numbers<[1], [0], [0], [1], [0, 0, 1, 1], [], []>} : vector<8x64xbf16>, vector<64x128xbf16>, vector<8x128xf32> -> vector<8x128xf32>
    %c0_17 = arith.constant 0 : index
    %c0_18 = arith.constant 0 : index
    %43 = vector.load %arg4[%c0_17, %c0_18] : memref<1x128xf32, #tpu.memory_space<vmem>>, vector<1x128xf32>
    %44 = vector.broadcast %43 : vector<1x128xf32> to vector<8x128xf32>
    %45 = arith.addf %42, %44 : vector<8x128xf32>
    %46 = arith.truncf %21 : vector<8x64xf32> to vector<8x64xbf16>
    %c0_19 = arith.constant 0 : index
    %c0_20 = arith.constant 0 : index
    %47 = vector.load %arg5[%c0_19, %c0_20] : memref<64x64xbf16, #tpu.memory_space<vmem>>, vector<64x64xbf16>
    %cst_21 = arith.constant dense<0.000000e+00> : vector<8x64xf32>
    %48 = tpu.matmul %46, %47, %cst_21 {dimension_numbers = #tpu.dot_dimension_numbers<[1], [0], [0], [1], [0, 0, 1, 1], [], []>} : vector<8x64xbf16>, vector<64x64xbf16>, vector<8x64xf32> -> vector<8x64xf32>
    %c0_22 = arith.constant 0 : index
    %c0_23 = arith.constant 0 : index
    %49 = vector.load %arg6[%c0_22, %c0_23] : memref<1x64xf32, #tpu.memory_space<vmem>>, vector<1x64xf32>
    %50 = vector.broadcast %49 : vector<1x64xf32> to vector<8x64xf32>
    %51 = arith.addf %48, %50 : vector<8x64xf32>
    %52 = vector.extract_strided_slice %45 {offsets = [0, 0], sizes = [8, 64], strides = [1, 1]} : vector<8x128xf32> to vector<8x64xf32>
    %53 = vector.extract_strided_slice %45 {offsets = [0, 64], sizes = [8, 64], strides = [1, 1]} : vector<8x128xf32> to vector<8x64xf32>
    %54 = vector.shape_cast %52 : vector<8x64xf32> to vector<1x8x64xf32>
    %55 = arith.truncf %54 : vector<1x8x64xf32> to vector<1x8x64xbf16>
    %56 = vector.shape_cast %51 : vector<8x64xf32> to vector<1x8x64xf32>
    %57 = arith.truncf %56 : vector<1x8x64xf32> to vector<1x8x64xbf16>
    %58 = vector.shape_cast %53 : vector<8x64xf32> to vector<1x8x64xf32>
    %59 = arith.truncf %58 : vector<1x8x64xf32> to vector<1x8x64xbf16>
    %c0_24 = arith.constant 0 : index
    %c0_25 = arith.constant 0 : index
    %60 = vector.load %arg7[%c0_24, %c0_25] : memref<64x64xbf16, #tpu.memory_space<vmem>>, vector<64x64xbf16>
    %61 = vector.extract_strided_slice %55 {offsets = [0, 0, 0], sizes = [1, 8, 32], strides = [1, 1, 1]} : vector<1x8x64xbf16> to vector<1x8x32xbf16>
    %62 = vector.extract_strided_slice %57 {offsets = [0, 0, 0], sizes = [1, 8, 32], strides = [1, 1, 1]} : vector<1x8x64xbf16> to vector<1x8x32xbf16>
    "tpu.trace_start"() <{level = 10 : i32, message = "bqd,bkd->bqk"}> : () -> ()
    %cst_26 = arith.constant dense<0.000000e+00> : vector<1x8x8xf32>
    %63 = tpu.matmul %61, %62, %cst_26 {dimension_numbers = #tpu.dot_dimension_numbers<[2], [2], [1], [1], [0, 0, 0, 1, 1, 1], [0], [0]>} : vector<1x8x32xbf16>, vector<1x8x32xbf16>, vector<1x8x8xf32> -> vector<1x8x8xf32>
    "tpu.trace_stop"() : () -> ()
    %cst_27 = arith.constant dense<0xFF800000> : vector<1x8xf32>
    %64 = vector.multi_reduction <maximumf>, %63, %cst_27 [2] : vector<1x8x8xf32> to vector<1x8xf32>
    %65 = vector.shape_cast %64 : vector<1x8xf32> to vector<1x8x1xf32>
    %66 = vector.broadcast %65 : vector<1x8x1xf32> to vector<1x8x8xf32>
    %67 = arith.subf %63, %66 : vector<1x8x8xf32>
    %68 = math.exp %67 : vector<1x8x8xf32>
    %cst_28 = arith.constant dense<0.000000e+00> : vector<1x8xf32>
    %69 = vector.multi_reduction <add>, %68, %cst_28 [2] : vector<1x8x8xf32> to vector<1x8xf32>
    %70 = vector.shape_cast %69 : vector<1x8xf32> to vector<1x8x1xf32>
    %71 = tpu.reciprocal %70 {approx = true} : vector<1x8x1xf32> -> vector<1x8x1xf32>
    %72 = vector.broadcast %71 : vector<1x8x1xf32> to vector<1x8x8xf32>
    %73 = arith.mulf %68, %72 : vector<1x8x8xf32>
    %74 = arith.truncf %73 : vector<1x8x8xf32> to vector<1x8x8xbf16>
    %75 = vector.extract_strided_slice %59 {offsets = [0, 0, 0], sizes = [1, 8, 32], strides = [1, 1, 1]} : vector<1x8x64xbf16> to vector<1x8x32xbf16>
    "tpu.trace_start"() <{level = 10 : i32, message = "bqk,bkd->bqd"}> : () -> ()
    %cst_29 = arith.constant dense<0.000000e+00> : vector<1x8x32xf32>
    %76 = tpu.matmul %74, %75, %cst_29 {dimension_numbers = #tpu.dot_dimension_numbers<[2], [1], [1], [2], [0, 0, 0, 1, 1, 2], [0], [0]>} : vector<1x8x8xbf16>, vector<1x8x32xbf16>, vector<1x8x32xf32> -> vector<1x8x32xf32>
    "tpu.trace_stop"() : () -> ()
    %77 = vector.shape_cast %76 : vector<1x8x32xf32> to vector<8x32xf32>
    %78 = arith.truncf %77 : vector<8x32xf32> to vector<8x32xbf16>
    %79 = vector.extract_strided_slice %60 {offsets = [0, 0], sizes = [32, 64], strides = [1, 1]} : vector<64x64xbf16> to vector<32x64xbf16>
    %cst_30 = arith.constant dense<0.000000e+00> : vector<8x64xf32>
    %80 = tpu.matmul %78, %79, %cst_30 {dimension_numbers = #tpu.dot_dimension_numbers<[1], [0], [0], [1], [0, 0, 1, 1], [], []>} : vector<8x32xbf16>, vector<32x64xbf16>, vector<8x64xf32> -> vector<8x64xf32>
    %81 = vector.extract_strided_slice %55 {offsets = [0, 0, 32], sizes = [1, 8, 32], strides = [1, 1, 1]} : vector<1x8x64xbf16> to vector<1x8x32xbf16>
    %82 = vector.extract_strided_slice %57 {offsets = [0, 0, 32], sizes = [1, 8, 32], strides = [1, 1, 1]} : vector<1x8x64xbf16> to vector<1x8x32xbf16>
    "tpu.trace_start"() <{level = 10 : i32, message = "bqd,bkd->bqk"}> : () -> ()
    %cst_31 = arith.constant dense<0.000000e+00> : vector<1x8x8xf32>
    %83 = tpu.matmul %81, %82, %cst_31 {dimension_numbers = #tpu.dot_dimension_numbers<[2], [2], [1], [1], [0, 0, 0, 1, 1, 1], [0], [0]>} : vector<1x8x32xbf16>, vector<1x8x32xbf16>, vector<1x8x8xf32> -> vector<1x8x8xf32>
    "tpu.trace_stop"() : () -> ()
    %cst_32 = arith.constant dense<0xFF800000> : vector<1x8xf32>
    %84 = vector.multi_reduction <maximumf>, %83, %cst_32 [2] : vector<1x8x8xf32> to vector<1x8xf32>
    %85 = vector.shape_cast %84 : vector<1x8xf32> to vector<1x8x1xf32>
    %86 = vector.broadcast %85 : vector<1x8x1xf32> to vector<1x8x8xf32>
    %87 = arith.subf %83, %86 : vector<1x8x8xf32>
    %88 = math.exp %87 : vector<1x8x8xf32>
    %cst_33 = arith.constant dense<0.000000e+00> : vector<1x8xf32>
    %89 = vector.multi_reduction <add>, %88, %cst_33 [2] : vector<1x8x8xf32> to vector<1x8xf32>
    %90 = vector.shape_cast %89 : vector<1x8xf32> to vector<1x8x1xf32>
    %91 = tpu.reciprocal %90 {approx = true} : vector<1x8x1xf32> -> vector<1x8x1xf32>
    %92 = vector.broadcast %91 : vector<1x8x1xf32> to vector<1x8x8xf32>
    %93 = arith.mulf %88, %92 : vector<1x8x8xf32>
    %94 = arith.truncf %93 : vector<1x8x8xf32> to vector<1x8x8xbf16>
    %95 = vector.extract_strided_slice %59 {offsets = [0, 0, 32], sizes = [1, 8, 32], strides = [1, 1, 1]} : vector<1x8x64xbf16> to vector<1x8x32xbf16>
    "tpu.trace_start"() <{level = 10 : i32, message = "bqk,bkd->bqd"}> : () -> ()
    %cst_34 = arith.constant dense<0.000000e+00> : vector<1x8x32xf32>
    %96 = tpu.matmul %94, %95, %cst_34 {dimension_numbers = #tpu.dot_dimension_numbers<[2], [1], [1], [2], [0, 0, 0, 1, 1, 2], [0], [0]>} : vector<1x8x8xbf16>, vector<1x8x32xbf16>, vector<1x8x32xf32> -> vector<1x8x32xf32>
    "tpu.trace_stop"() : () -> ()
    %97 = vector.shape_cast %96 : vector<1x8x32xf32> to vector<8x32xf32>
    %98 = arith.truncf %97 : vector<8x32xf32> to vector<8x32xbf16>
    %99 = vector.extract_strided_slice %60 {offsets = [32, 0], sizes = [32, 64], strides = [1, 1]} : vector<64x64xbf16> to vector<32x64xbf16>
    %cst_35 = arith.constant dense<0.000000e+00> : vector<8x64xf32>
    %100 = tpu.matmul %98, %99, %cst_35 {dimension_numbers = #tpu.dot_dimension_numbers<[1], [0], [0], [1], [0, 0, 1, 1], [], []>} : vector<8x32xbf16>, vector<32x64xbf16>, vector<8x64xf32> -> vector<8x64xf32>
    %101 = arith.addf %80, %100 : vector<8x64xf32>
    %c0_36 = arith.constant 0 : index
    %c0_37 = arith.constant 0 : index
    %102 = vector.load %arg8[%c0_36, %c0_37] : memref<1x64xf32, #tpu.memory_space<vmem>>, vector<1x64xf32>
    %103 = vector.broadcast %102 : vector<1x64xf32> to vector<8x64xf32>
    %104 = arith.addf %101, %103 : vector<8x64xf32>
    %105 = arith.addf %104, %1 : vector<8x64xf32>
    %cst_38 = arith.constant dense<0.000000e+00> : vector<8xf32>
    %106 = vector.multi_reduction <add>, %105, %cst_38 [1] : vector<8x64xf32> to vector<8xf32>
    %107 = vector.shape_cast %106 : vector<8xf32> to vector<8x1xf32>
    %cst_39 = arith.constant 6.400000e+01 : f32
    %108 = vector.broadcast %cst_39 : f32 to vector<8x1xf32>
    %109 = arith.divf %107, %108 : vector<8x1xf32>
    %110 = vector.broadcast %109 : vector<8x1xf32> to vector<8x64xf32>
    %111 = arith.subf %105, %110 : vector<8x64xf32>
    %112 = arith.mulf %111, %111 : vector<8x64xf32>
    %cst_40 = arith.constant dense<0.000000e+00> : vector<8xf32>
    %113 = vector.multi_reduction <add>, %112, %cst_40 [1] : vector<8x64xf32> to vector<8xf32>
    %114 = vector.shape_cast %113 : vector<8xf32> to vector<8x1xf32>
    %cst_41 = arith.constant 6.400000e+01 : f32
    %115 = vector.broadcast %cst_41 : f32 to vector<8x1xf32>
    %116 = arith.divf %114, %115 : vector<8x1xf32>
    %117 = vector.broadcast %109 : vector<8x1xf32> to vector<8x64xf32>
    %118 = arith.subf %105, %117 : vector<8x64xf32>
    %cst_42 = arith.constant 9.99999997E-7 : f32
    %119 = vector.broadcast %cst_42 : f32 to vector<8x1xf32>
    %120 = arith.addf %116, %119 : vector<8x1xf32>
    %121 = math.rsqrt %120 : vector<8x1xf32>
    %122 = vector.broadcast %121 : vector<8x1xf32> to vector<8x64xf32>
    %123 = arith.mulf %118, %122 : vector<8x64xf32>
    %124 = arith.truncf %123 : vector<8x64xf32> to vector<8x64xbf16>
    %c0_43 = arith.constant 0 : index
    %c0_44 = arith.constant 0 : index
    %125 = vector.load %arg9[%c0_43, %c0_44] : memref<64x256xbf16, #tpu.memory_space<vmem>>, vector<64x256xbf16>
    %cst_45 = arith.constant dense<0.000000e+00> : vector<8x256xf32>
    %126 = tpu.matmul %124, %125, %cst_45 {dimension_numbers = #tpu.dot_dimension_numbers<[1], [0], [0], [1], [0, 0, 1, 1], [], []>} : vector<8x64xbf16>, vector<64x256xbf16>, vector<8x256xf32> -> vector<8x256xf32>
    %c0_46 = arith.constant 0 : index
    %c0_47 = arith.constant 0 : index
    %127 = vector.load %arg10[%c0_46, %c0_47] : memref<1x256xf32, #tpu.memory_space<vmem>>, vector<1x256xf32>
    %128 = vector.broadcast %127 : vector<1x256xf32> to vector<8x256xf32>
    %129 = arith.addf %126, %128 : vector<8x256xf32>
    %cst_48 = arith.constant 5.000000e-01 : f32
    %130 = vector.broadcast %cst_48 : f32 to vector<8x256xf32>
    %131 = arith.mulf %130, %129 : vector<8x256xf32>
    %cst_49 = arith.constant 0.707106769 : f32
    %132 = vector.broadcast %cst_49 : f32 to vector<8x256xf32>
    %133 = arith.mulf %129, %132 : vector<8x256xf32>
    %134 = math.erf %133 : vector<8x256xf32>
    %cst_50 = arith.constant 1.000000e+00 : f32
    %135 = vector.broadcast %cst_50 : f32 to vector<8x256xf32>
    %136 = arith.addf %135, %134 : vector<8x256xf32>
    %137 = arith.mulf %131, %136 : vector<8x256xf32>
    %138 = arith.truncf %137 : vector<8x256xf32> to vector<8x256xbf16>
    %c0_51 = arith.constant 0 : index
    %c0_52 = arith.constant 0 : index
    %139 = vector.load %arg11[%c0_51, %c0_52] : memref<256x64xbf16, #tpu.memory_space<vmem>>, vector<256x64xbf16>
    %cst_53 = arith.constant dense<0.000000e+00> : vector<8x64xf32>
    %140 = tpu.matmul %138, %139, %cst_53 {dimension_numbers = #tpu.dot_dimension_numbers<[1], [0], [0], [1], [0, 0, 1, 1], [], []>} : vector<8x256xbf16>, vector<256x64xbf16>, vector<8x64xf32> -> vector<8x64xf32>
    %c0_54 = arith.constant 0 : index
    %c0_55 = arith.constant 0 : index
    %141 = vector.load %arg12[%c0_54, %c0_55] : memref<1x64xf32, #tpu.memory_space<vmem>>, vector<1x64xf32>
    %142 = vector.broadcast %141 : vector<1x64xf32> to vector<8x64xf32>
    %143 = arith.addf %140, %142 : vector<8x64xf32>
    %144 = arith.addf %143, %105 : vector<8x64xf32>
    %145 = vector.shape_cast %144 : vector<8x64xf32> to vector<1x8x64xf32>
    %c0_56 = arith.constant 0 : index
    %c0_57 = arith.constant 0 : index
    %c0_58 = arith.constant 0 : index
    %146 = vector.load %arg13[%c0_56, %c0_57, %c0_58] : memref<1x8x64xf32, #tpu.memory_space<vmem>>, vector<1x8x64xf32>
    tpu.vector_store %arg13[%c0_56, %c0_57, %c0_58], %145 {strides = array<i32>} : memref<1x8x64xf32, #tpu.memory_space<vmem>>, vector<1x8x64xf32>,
    return
  }
  func.func @transform_0(%arg0: i32) -> (i32, i32, i32) {
    %c0_i32 = arith.constant 0 : i32
    %c0_i32_0 = arith.constant 0 : i32
    %c0_i32_1 = arith.constant 0 : i32
    return %arg0, %c0_i32, %c0_i32_0 : i32, i32, i32
  }
  func.func @transform_1(%arg0: i32) -> (i32, i32, i32) {
    %c0_i32 = arith.constant 0 : i32
    %c0_i32_0 = arith.constant 0 : i32
    %c0_i32_1 = arith.constant 0 : i32
    return %arg0, %c0_i32, %c0_i32_0 : i32, i32, i32
  }
  func.func @transform_2(%arg0: i32) -> (i32, i32) {
    %c0_i32 = arith.constant 0 : i32
    %c0_i32_0 = arith.constant 0 : i32
    %c0_i32_1 = arith.constant 0 : i32
    return %c0_i32, %c0_i32_0 : i32, i32
  }
  func.func @transform_3(%arg0: i32) -> (i32, i32) {
    %c0_i32 = arith.constant 0 : i32
    %c0_i32_0 = arith.constant 0 : i32
    %c0_i32_1 = arith.constant 0 : i32
    return %c0_i32, %c0_i32_0 : i32, i32
  }
  func.func @transform_4(%arg0: i32) -> (i32, i32) {
    %c0_i32 = arith.constant 0 : i32
    %c0_i32_0 = arith.constant 0 : i32
    %c0_i32_1 = arith.constant 0 : i32
    return %c0_i32, %c0_i32_0 : i32, i32
  }
  func.func @transform_5(%arg0: i32) -> (i32, i32) {
    %c0_i32 = arith.constant 0 : i32
    %c0_i32_0 = arith.constant 0 : i32
    %c0_i32_1 = arith.constant 0 : i32
    return %c0_i32, %c0_i32_0 : i32, i32
  }
  func.func @transform_6(%arg0: i32) -> (i32, i32) {
    %c0_i32 = arith.constant 0 : i32
    %c0_i32_0 = arith.constant 0 : i32
    %c0_i32_1 = arith.constant 0 : i32
    return %c0_i32, %c0_i32_0 : i32, i32
  }
  func.func @transform_7(%arg0: i32) -> (i32, i32) {
    %c0_i32 = arith.constant 0 : i32
    %c0_i32_0 = arith.constant 0 : i32
    %c0_i32_1 = arith.constant 0 : i32
    return %c0_i32, %c0_i32_0 : i32, i32
  }
  func.func @transform_8(%arg0: i32) -> (i32, i32) {
    %c0_i32 = arith.constant 0 : i32
    %c0_i32_0 = arith.constant 0 : i32
    %c0_i32_1 = arith.constant 0 : i32
    return %c0_i32, %c0_i32_0 : i32, i32
  }
  func.func @transform_9(%arg0: i32) -> (i32, i32) {
    %c0_i32 = arith.constant 0 : i32
    %c0_i32_0 = arith.constant 0 : i32
    %c0_i32_1 = arith.constant 0 : i32
    return %c0_i32, %c0_i32_0 : i32, i32
  }
  func.func @transform_10(%arg0: i32) -> (i32, i32) {
    %c0_i32 = arith.constant 0 : i32
    %c0_i32_0 = arith.constant 0 : i32
    %c0_i32_1 = arith.constant 0 : i32
    return %c0_i32, %c0_i32_0 : i32, i32
  }
  func.func @transform_11(%arg0: i32) -> (i32, i32) {
    %c0_i32 = arith.constant 0 : i32
    %c0_i32_0 = arith.constant 0 : i32
    %c0_i32_1 = arith.constant 0 : i32
    return %c0_i32, %c0_i32_0 : i32, i32
  }
  func.func @transform_12(%arg0: i32) -> (i32, i32, i32) {
    %c0_i32 = arith.constant 0 : i32
    %c0_i32_0 = arith.constant 0 : i32
    %c0_i32_1 = arith.constant 0 : i32
    return %arg0, %c0_i32, %c0_i32_0 : i32, i32, i32
  }
}

</mosaic_0001>

<bundles_post_ra>
// kernel: block_forward.1
= control target key start
LH: loop header
LB: loop body
LE: loop exit
PB: predicated region body
PF: predicated region fallthrough
CT: control target
= control target key end

     0   :  { %s2053_s0 = inlined_call_operand.vmem [shape: f32[2,8,64], index: 0, kind: input, shape index: {}]   ;;  %s2054_s1 = inlined_call_operand.vmem [shape: f32[2,8,64], index: 1, kind: input, shape index: {}]   ;;  %s2055_s2 = inlined_call_operand.vmem [shape: bf16[64,128], index: 2, kind: input, shape index: {}]   ;;  %s2056_s3 = inlined_call_operand.vmem [shape: f32[1,128], index: 3, kind: input, shape index: {}]   ;;  %s2057_s4 = inlined_call_operand.vmem [shape: bf16[64,64], index: 4, kind: input, shape index: {}]   ;;  %s2058_s5 = inlined_call_operand.vmem [shape: f32[1,64], index: 5, kind: input, shape index: {}]   ;;  %s2059_s6 = inlined_call_operand.vmem [shape: bf16[64,64], index: 6, kind: input, shape index: {}]   ;;  %s2060_s7 = inlined_call_operand.vmem [shape: f32[1,64], index: 7, kind: input, shape index: {}]   ;;  %s2061_s8 = inlined_call_operand.vmem [shape: bf16[64,256], index: 8, kind: input, shape index: {}]   ;;  %s2062_s9 = inlined_call_operand.vmem [shape: f32[1,256], index: 9, kind: input, shape index: {}]   ;;  %s2063_s10 = inlined_call_operand.vmem [shape: bf16[256,64], index: 10, kind: input, shape index: {}]   ;;  %s2064_s11 = inlined_call_operand.vmem [shape: f32[1,64], index: 11, kind: input, shape index: {}]   ;;  %s2065_s12 = inlined_call_operand.hbm [shape: f32[2,8,64], index: 12, kind: output, shape index: {}]  }
   0x1   :  { %2066 = sst [smem:[#allocation5_spill]] %s2053_s0 }
   0x2   :  { %2067 = sst [smem:[#allocation6_spill]] %s2054_s1 }
   0x3   :  { %2068 = sst [smem:[#allocation7_spill]] %s2055_s2 }
   0x4   :  { %17 = vsyncpa [#allocation3], 0 }
   0x5   :  { %19 = vsyncpa [#allocation3 + $0x1], 0  ;;  %s1774_s21 = smov 0   ;;  %s1776_s22 = smov 0  }
   0x6   :  { %s1778_s23 = smov 0   ;;  %s1780_s24 = smov 0  }
   0x7 LB: > { %s1795_s25 = sadd.s32 4294967295, %s1700_s24   ;;  %s1367_s26 = sadd.s32 4294967294, %s1700_s24   ;;  %s1700_s24 = sphi %s1780_s24, %s2077_s24   ;;  %s1696_s23 = sphi %s1778_s23, %s2076_s23   ;;  %s1692_s22 = sphi %s1776_s22, %s2075_s22   ;;  %s1688_s21 = sphi %s1774_s21, %s2074_s21  }
   0x8   : > { %s1799_s27 = sadd.s32 1, %s1700_s24   ;;  %s294_s28 = sadd.s32 1, %s1696_s23 }
   0x9   : > { %s291_s29 = ssub.s32 %s1700_s24, %s1799_s27  ;;  %p304_p0 = scmp.ne.s32.totalorder %s1696_s23, %s1692_s22 }
   0xa   : > { %p292_p1 = scmp.eq.s32.totalorder %s291_s29, 0  ;;  %p305_p2 = scmp.eq.s32.totalorder %s1795_s25, 1 }
   0xb   : > { %p310_p3 = scmp.ne.s32.totalorder %s1692_s22, %s1688_s21  ;;  %p311_p4 = scmp.eq.s32.totalorder %s1367_s26, 1 }
   0xc   : > { %s1810_s30 = scalar_select %p292_p1, %s1696_s23, %s294_s28  }
   0xd   : > { %p1812_p5 = por %p305_p2, %p304_p0  ;;  %p1816_p6 = por %p311_p4, %p310_p3 }
   0xe   : > { %p1370_p7 = scmp.ge.s32.totalorder %s1700_s24, 1  ;;  %p373_p8 = scmp.lt.s32.totalorder %s1700_s24, 3 }
  0x10   : > { %p374_p9 = pnand %p1370_p7, %p373_p8 }
  0x11   : > { %p418_p10 = scmp.lt.s32.totalorder (!%p374_p9), %s1795_s25, 1  ;;  %s2071_s0 = sld [smem:[#allocation5_spill]] (!%p374_p9) }
  0x12   : > { %377 = sbr.rel (%p374_p9) target bundleno = 2695 (0xa87), region = 68  ;;  %s2072_s1 = sld [smem:[#allocation6_spill]] (!%p374_p9) }
  0x13   : > { %s2073_s2 = sld [smem:[#allocation7_spill]] (!%p374_p9)  ;;  %s1705_s17 = smov (!%p374_p9), 96  }
  0x14   : > { %s1706_s18 = smov (!%p374_p9), 32   ;;  %s415_s26 = sand.u32 (!%p374_p9), 1, %s1692_s22  }
  0x15   : > { %s1283_s29 = scalar_lea.sflag (!%p374_p9), [#allocation3], %s415_s26 }
  0x17   : > { %vm429_vm0 = vcmask 523264   ;;  %s419_s15 = scalar_select %p418_p10, %s1795_s25, 1  ;;  %v1582_v14 = vld [vmem:[%s2057_s4 + $0x18] sm:$0xff]   ;;  %v1702_v15 = vmov 0.0   ;;  %v1584_v17 = vld [vmem:[%s2057_s4 + $0x10] sm:$0xff]   ;;  %vm1703_vm1 = vmmov 0  }
  0x18   : > { %1485 = vmatprep.subr.bf16.mxu1 %v1702_v15  ;;  %1473 = vmatprep.subr.bf16.mxu0 %v1702_v15  ;;  %v1586_v19 = vld [vmem:[%s2057_s4 + $0x8] sm:$0xff]   ;;  %v1588_v21 = vld [vmem:[%s2057_s4] sm:$0xff]   ;;  %vm633_vm2 = vcmask 261120   ;;  %vm680_vm3 = vcmask 64512   ;;  %vm699_vm4 = vcmask 1043456  }
  0x19   : > { %s1372_s16 = sshll.u32 %s419_s15, 3  ;;  %1486 = vmatpush3.bf16.msra.mxu1 %v1582_v14  ;;  %v1583_v16 = vld [vmem:[%s2073_s2 + $0x18] sm:$0xff]   ;;  %1493 = vmatprep.mubr.msk.bf16.mxu1 %vm1703_vm1, %v1702_v15  ;;  %v1585_v18 = vld [vmem:[%s2073_s2 + $0x10] sm:$0xff]   ;;  %v1587_v20 = vld [vmem:[%s2073_s2 + $0x8] sm:$0xff]  }
  0x1a   : > { %s421_s19 = scalar_lea.vmem %s2071_s0, %s1372_s16  ;;  %s425_s28 = scalar_lea.vmem %s2072_s1, %s1372_s16  ;;  %1487 = vmatprep.subr.bf16.mxu1 %v1702_v15  ;;  %1481 = vmatprep.mubr.msk.bf16.mxu0 %vm1703_vm1, %v1702_v15  ;;  %v1589_v22 = vld [vmem:[%s2073_s2] sm:$0xff]  }
  0x1b   : > { %v1830_v0 = vld [vmem:[%s421_s19] sm:$0xff]  ;;  %1474 = vmatpush3.bf16.msra.mxu0 %v1583_v16  ;;  %s1704_s16 = smov 64   ;;  %s1424_s0 = sshll.u32 %s1795_s25, 7 }
  0x1c   : > { %v428_v1 = vld [vmem:[%s425_s28] sm:$0xff]  ;;  %v430_v2 = vsel %vm429_vm0, %v1830_v0, 0.0  ;;  %1475 = vmatprep.subr.bf16.mxu0 %v1702_v15  ;;  %s1371_s28 = sshll.u32 %s415_s26, 3  ;;  %s1294_s20 = scalar_lea.hbm %s2065_s12, %s1424_s0 }
  0x1d   : > { %v444_v3 = vsel %vm429_vm0, %v428_v1, 0.0  ;;  %431 = vadd.xlane.f32.xlu0 %v430_v2  ;;  %1488 = vmatpush3.bf16.msra.mxu1 %v1584_v17  ;;  %v1380_v35 = vld [vmem:[%s2058_s5] ss:$0 sm:$0xff]  ;;  %s1708_s25 = smov [#allocation2]  }
  0x1e   : > { %1489 = vmatprep.subr.bf16.mxu1 %v1702_v15  ;;  %v1374_v40 = vld [vmem:[%s2056_s3] ss:$0 sm:$0xff] }
  0x1f   : > { %1476 = vmatpush3.bf16.msra.mxu0 %v1585_v18 }
  0x20   : > { %1477 = vmatprep.subr.bf16.mxu0 %v1702_v15 }
  0x21   : > { %445 = vadd.xlane.f32.xlu0 %v444_v3  ;;  %1490 = vmatpush3.bf16.msra.mxu1 %v1586_v19 }
  0x22   : > { %1491 = vmatprep.subr.bf16.mxu1 %v1702_v15 }
  0x23   : > { %1478 = vmatpush3.bf16.msra.mxu0 %v1587_v20 }
  0x24   : > { %1479 = vmatprep.subr.bf16.mxu0 %v1702_v15 }
  0x25   : > { %1492 = vmatpush3.bf16.msra.mxu1 %v1588_v21  ;;  %v1592_v21 = vld [vmem:[%s2059_s6 + $0x18] sm:$0xff]  }
  0x26   : > { %1515 = vmatprep.subr.bf16.mxu1 %v1702_v15 }
  0x27   : > { %1480 = vmatpush3.bf16.msra.mxu0 %v1589_v22 }
  0x28   : > { %1497 = vmatprep.subr.bf16.mxu0 %v1702_v15 }
  0xa6   : > { %v432_v4 = vpop.xlane.xlu0 %431 }
  0xa7   : > { %v434_v5 = vmul.f32 0.015625, %v432_v4 }
  0xa9   : > { %v435_v6 = vsub.f32 %v1830_v0, %v434_v5 }
  0xaa   : > { %v446_v7 = vpop.xlane.xlu0 %445 }
  0xab   : > { %v447_v8 = vmul.f32 0.015625, %v446_v7  ;;  %v436_v9 = vmul.f32 %v435_v6, %v435_v6 }
  0xad   : > { %v448_v10 = vsub.f32 %v428_v1, %v447_v8  ;;  %v437_v11 = vsel %vm429_vm0, %v436_v9, 0.0 }
  0xae   : > { %438 = vadd.xlane.f32.xlu1 %v437_v11 }
  0xaf   : > { %v449_v12 = vmul.f32 %v448_v10, %v448_v10 }
  0xb1   : > { %v450_v13 = vsel %vm429_vm0, %v449_v12, 0.0 }
  0xb2   : > { %451 = vadd.xlane.f32.xlu1 %v450_v13 }
 0x137   : > { %v439_v23 = vpop.xlane.xlu1 %438 }
 0x138   : > { %v440_v24 = vmul.f32 0.015625, %v439_v23 }
 0x13a   : > { %v441_v25 = vadd.f32 1e-06, %v440_v24 }
 0x13b   : > { %v452_v26 = vpop.xlane.xlu1 %451 }
 0x13c   : > { %1622 = vrsqrt.f32 %v441_v25  ;;  %v453_v27 = vmul.f32 0.015625, %v452_v26 }
 0x13e   : > { %v454_v28 = vadd.f32 1e-06, %v453_v27  ;;  %v1590_v27 = vld [vmem:[%s2059_s6 + $0x8] sm:$0xff]  }
 0x140   : > { %1624 = vrsqrt.f32 %v454_v28 }
 0x149   : > { %v1623_v29 = vpop.eup %1622 }
 0x14a   : > { %v443_v30 = vmul.f32 %v1623_v29, %v435_v6  ;;  %v1591_v29 = vld [vmem:[%s2059_s6] sm:$0xff]  }
 0x14c   : > { %v540_v31 = vpack.c.bf16 %v443_v30, %v443_v30 }
 0x14d   : > { %v1625_v32 = vpop.eup %1624 }
 0x14e   : > { %1494 = vmatmul.mubr.msk.bf16.vlgmr.msra.gmra.mxu1 %vm429_vm0, %v540_v31  ;;  %v456_v33 = vmul.f32 %v1625_v32, %v448_v10  ;;  %v1593_v31 = vld [vmem:[%s2059_s6 + $0x10] sm:$0xff]  }
 0x14f   : > { %1517 = vmatprep.mubr.msk.bf16.mxu1 %vm1703_vm1, %v1702_v15 }
 0x150   : > { %v457_v34 = vpack.c.bf16 %v456_v33, %v456_v33 }
 0x152   : > { %1482 = vmatmul.mubr.msk.bf16.vlgmr.msra.gmra.mxu0 %vm429_vm0, %v457_v34 }
 0x153   : > { %1499 = vmatprep.mubr.msk.bf16.mxu0 %vm1703_vm1, %v1702_v15 }
 0x20e   : > { %v617_v36 = vpop.f32.mrf.mxu1 }
 0x20f   : > { %v618_v37 = vadd.f32 %v1380_v35, %v617_v36 }
 0x210   : > { %v1495_v38 = vpop.f32.mrf.mxu1 }
 0x211   : > { %v624_v39 = vpack.c.bf16 %v618_v37, %v618_v37 }
 0x212   : > { %v534_v41 = vpop.f32.mrf.mxu0  ;;  %v620_v42 = vpop.f32.mrf.mxu1 }
 0x213   : > { %v638_v43 = vsel %vm633_vm2, %v624_v39, 0  ;;  %v535_v46 = vadd.f32 %v1374_v40, %v534_v41  ;;  %v1396_v41 = vld [vmem:[%s2060_s7] ss:$0 sm:$0xff] }
 0x214   : > { %v1483_v44 = vpop.f32.mrf.mxu0  ;;  %v1496_v45 = vpop.f32.mrf.mxu1  ;;  %1498 = vmatpush3.bf16.xpose.msra.mxu0 %v638_v43 }
 0x215   : > { %1503 = vmatprep.subr.bf16.mxu0 %v1702_v15  ;;  %v623_v49 = vpack.c.bf16 %v535_v46, %v535_v46 }
 0x216   : > { %v537_v47 = vpop.f32.mrf.mxu0 }
 0x218   : > { %v1484_v48 = vpop.f32.mrf.mxu0 }
 0x21b   : > { %1500 = vmatmul.mubr.msk.bf16.vlgmr.msra.gmra.mxu0 %vm633_vm2, %v623_v49 }
 0x21c   : > { %1505 = vmatprep.mubr.msk.bf16.mxu0 %vm1703_vm1, %v1702_v15 }
 0x2db   : > { %v674_v50 = vpop.f32.mrf.mxu0 }
 0x2dc   : > { %v681_v51 = vsel %vm680_vm3, %v674_v50, -inf }
 0x2dd   : > { %682 = vmax.xlane.f32.xlu0 %v681_v51  ;;  %v1501_v52 = vpop.f32.mrf.mxu0 }
 0x2df   : > { %v677_v53 = vpop.f32.mrf.mxu0 }
 0x2e1   : > { %v1502_v54 = vpop.f32.mrf.mxu0 }
 0x2e2   : > { %v1594_v54 = vld [vmem:[%s2061_s8 + $0x30] ss:$8 sps:$4 sm:$0xff]  }
 0x2f3   : > { %694 = vrot.lane.b32.xlu0 %v623_v49, %s1704_s16  ;;  %s417_s16 = scalar_lea.vmem [#allocation2], %s1371_s28  ;;  %s1644_s28 = sshll.u32 %s1708_s25, 4  ;;  %s1645_s28 = int_to_ptr.vmem [resolvable:$false] %s1644_s28 }
 0x2f4   : > { %s1646_s1 = scalar_lea.vmem %s1645_s28, 256 }
 0x366   : > { %v683_v55 = vpop.xlane.xlu0 %682 }
 0x367   : > { %v684_v56 = vsub.f32 %v674_v50, %v683_v55  ;;  %v1599_v55 = vld [vmem:[%s2061_s8 + $0x24] ss:$8 sps:$4 sm:$0xff]  }
 0x369   : > { %v685_v57 = vmul.f32 1.442695, %v684_v56  ;;  %v1597_v56 = vld [vmem:[%s2061_s8 + $0x20] ss:$8 sps:$4 sm:$0xff]  }
 0x36a   : > { %v695_v58 = vpop.permute.xlu0 %694 }
 0x36b   : > { %1626 = vpow2.f32 %v685_v57  ;;  %v701_v59 = vsel %vm699_vm4, %v695_v58, 0  ;;  %v1707_v57 = vmov 0   ;;  %v1602_v58 = vld [vmem:[%s2061_s8 + $0x14] ss:$8 sps:$4 sm:$0xff]  }
 0x36c   : > { %1504 = vmatpush3.bf16.msra.mxu0 %v701_v59  ;;  %v1600_v59 = vld [vmem:[%s2061_s8 + $0x10] ss:$8 sps:$4 sm:$0xff]  }
 0x36d   : > { %1509 = vmatprep.subr.bf16.mxu0 %v1702_v15 }
 0x378   : > { %v1627_v60 = vpop.eup %1626 }
 0x379   : > { %v687_v61 = vsel %vm680_vm3, %v1627_v60, 0.0 }
 0x37a   : > { %688 = vadd.xlane.f32.xlu1 %v687_v61  ;;  %v1603_v61 = vld [vmem:[%s2061_s8] ss:$8 sps:$4 sm:$0xff]  }
 0x38b   : > { %747 = vrot.lane.b32.xlu1 %v624_v39, %s1705_s17 }
 0x38f   : > { %744 = vrot.lane.b32.xlu1 %v623_v49, %s1705_s17  ;;  %s1296_s17 = sshll.u32 %s417_s16, 4  ;;  %s1297_s17 = int_to_ptr.vmem [resolvable:$true] %s1296_s17 }
 0x390   : > { %s1640_s15 = scalar_lea.vmem %s1297_s17, 128  ;;  %p1647_p0 = scmp.lt.s32.totalorder %s1297_s17, %s1645_s28 }
 0x391   : > { %p1641_p11 = scmp.ne.s32.totalorder %s1297_s17, %s1640_s15  ;;  %p1648_p1 = scmp.lt.s32.totalorder %s1646_s1, %s1640_s15 }
 0x393   : > { %p1642_p12 = pnand %p1641_p11, %p1812_p5  ;;  %p1649_p2 = por %p1648_p1, %p1647_p0 }
 0x395   : > { %p1643_p13 = pneg %p1642_p12 }
 0x397   : > { %p1650_p3 = pnand %p1649_p2, %p1643_p13 }
 0x403   : > { %v689_v62 = vpop.xlane.xlu1 %688 }
 0x404   : > { %1628 = vrcp.f32 %v689_v62  ;;  %v1606_v62 = vld [vmem:[%s2063_s10 + $0x78] sm:$0xff]  }
 0x407   : > { %v748_v2 = vpop.permute.xlu1 %747 }
 0x408   : > { %v753_v4 = vsel %vm633_vm2, %v748_v2, 0 }
 0x40b   : > { %v745_v5 = vpop.permute.xlu1 %744 }
 0x411   : > { %v1629_v63 = vpop.eup %1628 }
 0x412   : > { %v691_v1 = vmul.f32 %v1629_v63, %v1627_v60  ;;  %v1605_v60 = vld [vmem:[%s2061_s8 + $0x4] ss:$8 sps:$4 sm:$0xff]   ;;  %v1607_v63 = vld [vmem:[%s2063_s10 + $0x38] sm:$0xff]  }
 0x414   : > { %v692_v3 = vpack.c.bf16 %v691_v1, %v691_v1 }
 0x416   : > { %1506 = vmatmul.mubr.msk.bf16.vlgmr.msra.gmra.mxu0 %vm680_vm3, %v692_v3 }
 0x417   : > { %1510 = vmatpush3.bf16.xpose.msra.mxu0 %v753_v4  ;;  %1511 = vmatprep.mubr.msk.bf16.mxu0 %vm1703_vm1, %v1702_v15 }
 0x418   : > { %1521 = vmatprep.subr.bf16.mxu0 %v1702_v15 }
 0x41e   : > { %1512 = vmatmul.mubr.msk.bf16.vlgmr.msra.gmra.mxu0 %vm633_vm2, %v745_v5 }
 0x41f   : > { %1525 = vmatprep.mubr.msk.bf16.mxu0 %vm1703_vm1, %v1702_v15  ;;  %1522 = vmatpush3.bf16.msra.mxu0 %v1592_v21  ;;  %v1621_v21 = vld [vmem:[%s2063_s10] sm:$0xff]  }
 0x420   : > { %1523 = vmatprep.subr.bf16.mxu0 %v1702_v15 }
 0x423   : > { %1524 = vmatpush3.bf16.msra.mxu0 %v1593_v31 }
 0x4d6   : > { %v737_v6 = vpop.f32.mrf.mxu0 }
 0x4d7   : > { %v743_v30 = vpack.c.bf16 %v737_v6, %v737_v6 }
 0x4d8   : > { %v1507_v7 = vpop.f32.mrf.mxu0 }
 0x4d9   : > { %v1608_v7 = vld [vmem:[%s2063_s10 + $0x70] sm:$0xff]  }
 0x4da   : > { %v740_v8 = vpop.f32.mrf.mxu0 }
 0x4db   : > { %v1609_v8 = vld [vmem:[%s2063_s10 + $0x30] sm:$0xff]  }
 0x4dc   : > { %v1508_v9 = vpop.f32.mrf.mxu0 }
 0x4dd   : > { %v1610_v9 = vld [vmem:[%s2063_s10 + $0x68] sm:$0xff]  }
 0x4de   : > { %v789_v10 = vpop.f32.mrf.mxu0 }
 0x4df   : > { %v795_v11 = vsel %vm680_vm3, %v789_v10, -inf }
 0x4e0   : > { %796 = vmax.xlane.f32.xlu1 %v795_v11  ;;  %v1513_v12 = vpop.f32.mrf.mxu0  ;;  %v1612_v11 = vld [vmem:[%s2063_s10 + $0x60] sm:$0xff]  }
 0x4e1   : > { %v1613_v12 = vld [vmem:[%s2063_s10 + $0x20] sm:$0xff]  }
 0x4e2   : > { %v792_v13 = vpop.f32.mrf.mxu0 }
 0x4e3   : > { %v1614_v13 = vld [vmem:[%s2063_s10 + $0x58] sm:$0xff]  }
 0x4e4   : > { %v1514_v14 = vpop.f32.mrf.mxu0 }
 0x4e5   : > { %v1615_v14 = vld [vmem:[%s2063_s10 + $0x18] sm:$0xff]  }
 0x569   : > { %v797_v16 = vpop.xlane.xlu1 %796 }
 0x56a   : > { %v798_v17 = vsub.f32 %v789_v10, %v797_v16  ;;  %v1611_v10 = vld [vmem:[%s2063_s10 + $0x28] sm:$0xff]   ;;  %v1616_v16 = vld [vmem:[%s2063_s10 + $0x50] sm:$0xff]  }
 0x56c   : > { %v799_v18 = vmul.f32 1.442695, %v798_v17  ;;  %v1617_v17 = vld [vmem:[%s2063_s10 + $0x10] sm:$0xff]  }
 0x56e   : > { %1630 = vpow2.f32 %v799_v18  ;;  %v1618_v18 = vld [vmem:[%s2063_s10 + $0x48] sm:$0xff]  }
 0x57b   : > { %v1631_v19 = vpop.eup %1630 }
 0x57c   : > { %v801_v20 = vsel %vm680_vm3, %v1631_v19, 0.0 }
 0x57d   : > { %802 = vadd.xlane.f32.xlu0 %v801_v20  ;;  %v1620_v20 = vld [vmem:[%s2063_s10 + $0x40] sm:$0xff]  }
 0x593   : > { %807 = vrot.lane.b32.xlu0 %v623_v49, %s1706_s18 }
 0x606   : > { %v803_v22 = vpop.xlane.xlu0 %802 }
 0x607   : > { %1632 = vrcp.f32 %v803_v22  ;;  %v999_v22 = vlaneseq }
 0x60a   : > { %v808_v23 = vpop.permute.xlu0 %807 }
 0x60b   : > { %v813_v24 = vsel %vm699_vm4, %v808_v23, 0  ;;  %v1000_v23 = vshrl.u32 %v999_v22, 7 }
 0x60c   : > { %1516 = vmatpush3.bf16.msra.mxu1 %v813_v24 }
 0x60d   : > { %1529 = vmatprep.subr.bf16.mxu1 %v1702_v15  ;;  %v1001_v24 = vsub.s32 0, %v1000_v23 }
 0x614   : > { %v1633_v25 = vpop.eup %1632 }
 0x615   : > { %v805_v26 = vmul.f32 %v1633_v25, %v1631_v19  ;;  %v1619_v19 = vld [vmem:[%s2063_s10 + $0x8] sm:$0xff]   ;;  %v997_v25 = vld [vmem:[%s2062_s9] sm:$0x3] }
 0x617   : > { %v806_v28 = vpack.c.bf16 %v805_v26, %v805_v26  ;;  %v1005_v26 = vsub.s32 1, %v1000_v23 }
 0x619   : > { %1518 = vmatmul.mubr.msk.bf16.vlgmr.msra.gmra.mxu1 %vm680_vm3, %v806_v28  ;;  %v1006_v28 = vrot.slane %v997_v25, %v1005_v26 }
 0x61a   : > { %1530 = vmatpush3.bf16.msra.mxu1 %v1590_v27  ;;  %1533 = vmatprep.mubr.msk.bf16.mxu1 %vm1703_vm1, %v1702_v15  ;;  %v1002_v27 = vrot.slane %v997_v25, %v1001_v24 }
 0x61b   : > { %1531 = vmatprep.subr.bf16.mxu1 %v1702_v15 }
 0x61e   : > { %1532 = vmatpush3.bf16.msra.mxu1 %v1591_v29 }
 0x61f   : > { %1451 = vmatprep.subr.bf16.mxu1 %v1606_v62 }
 0x621   : > { %1534 = vmatmul.mubr.msk.bf16.vlgmr.msra.gmra.mxu1 %vm633_vm2, %v743_v30 }
 0x622   : > { %1452 = vmatpush3.bf16.msra.mxu1 %v1607_v63 }
 0x623   : > { %1453 = vmatprep.subr.bf16.mxu1 %v1608_v7 }
 0x626   : > { %1454 = vmatpush3.bf16.msra.mxu1 %v1609_v8 }
 0x627   : > { %1455 = vmatprep.subr.bf16.mxu1 %v1610_v9 }
 0x62a   : > { %1456 = vmatpush3.bf16.msra.mxu1 %v1611_v10 }
 0x62b   : > { %1457 = vmatprep.subr.bf16.mxu1 %v1612_v11 }
 0x62e   : > { %1458 = vmatpush3.bf16.msra.mxu1 %v1613_v12 }
 0x62f   : > { %1459 = vmatprep.subr.bf16.mxu1 %v1614_v13 }
 0x632   : > { %1460 = vmatpush3.bf16.msra.mxu1 %v1615_v14 }
 0x633   : > { %1461 = vmatprep.subr.bf16.mxu1 %v1616_v16 }
 0x636   : > { %1462 = vmatpush3.bf16.msra.mxu1 %v1617_v17 }
 0x637   : > { %1463 = vmatprep.subr.bf16.mxu1 %v1618_v18 }
 0x63a   : > { %1464 = vmatpush3.bf16.msra.mxu1 %v1619_v19 }
 0x63b   : > { %1465 = vmatprep.subr.bf16.mxu1 %v1620_v20 }
 0x63e   : > { %1466 = vmatpush3.bf16.msra.mxu1 %v1621_v21 }
 0x6d9   : > { %v849_v32 = vpop.f32.mrf.mxu1 }
 0x6da   : > { %v855_v33 = vpack.c.bf16 %v849_v32, %v849_v32 }
 0x6db   : > { %v1519_v34 = vpop.f32.mrf.mxu1 }
 0x6dc   : > { %1526 = vmatmul.mubr.msk.bf16.vlgmr.msra.gmra.mxu0 %vm633_vm2, %v855_v33 }
 0x6dd   : > { %v852_v35 = vpop.f32.mrf.mxu1  ;;  %1084 = vmatprep.mubr.bf16.mxu0 %v1707_v57 }
 0x6df   : > { %v1520_v36 = vpop.f32.mrf.mxu1 }
 0x6e1   : > { %v960_v37 = vpop.f32.mrf.mxu1 }
 0x6e3   : > { %v1535_v38 = vpop.f32.mrf.mxu1 }
 0x6e5   : > { %v963_v39 = vpop.f32.mrf.mxu1 }
 0x6e7   : > { %v1536_v15 = vpop.f32.mrf.mxu1 }
 0x79c   : > { %v905_v40 = vpop.f32.mrf.mxu0 }
 0x79d   : > { %v961_v42 = vadd.f32 %v960_v37, %v905_v40 }
 0x79e   : > { %v1527_v43 = vpop.f32.mrf.mxu0 }
 0x79f   : > { %v973_v44 = vadd.f32 %v1396_v41, %v961_v42 }
 0x7a0   : > { %v908_v45 = vpop.f32.mrf.mxu0 }
 0x7a1   : > { %v1932_v46 = vadd.f32 %v973_v44, %v1830_v0  ;;  %v1596_v0 = vld [vmem:[%s2061_s8 + $0x34] ss:$8 sps:$4 sm:$0xff]  }
 0x7a2   : > { %v1528_v47 = vpop.f32.mrf.mxu0  ;;  %1060 = vmatprep.subr.bf16.mxu0 %v1596_v0 }
 0x7a3   : > { %v975_v48 = vsel %vm429_vm0, %v1932_v46, 0.0  ;;  %1061 = vmatpush1.bf16.msra.mxu0 %v1594_v54 }
 0x7a4   : > { %976 = vadd.xlane.f32.xlu1 %v975_v48  ;;  %1062 = vmatprep.subr.bf16.mxu0 %v1599_v55  ;;  %v1406_v48 = vld [vmem:[%s2064_s11] ss:$0 sm:$0xff] }
 0x7a7   : > { %1063 = vmatpush1.bf16.msra.mxu0 %v1597_v56 }
 0x7a8   : > { %1064 = vmatprep.subr.bf16.mxu0 %v1602_v58 }
 0x7ab   : > { %1065 = vmatpush1.bf16.msra.mxu0 %v1600_v59 }
 0x7ac   : > { %1066 = vmatprep.subr.bf16.mxu0 %v1605_v60 }
 0x7af   : > { %1067 = vmatpush1.bf16.msra.mxu0 %v1603_v61 }
 0x82d   : > { %v977_v49 = vpop.xlane.xlu1 %976 }
 0x82e   : > { %v978_v50 = vmul.f32 0.015625, %v977_v49 }
 0x830   : > { %v979_v51 = vsub.f32 %v1932_v46, %v978_v50 }
 0x832   : > { %v980_v52 = vmul.f32 %v979_v51, %v979_v51 }
 0x834   : > { %v981_v53 = vsel %vm429_vm0, %v980_v52, 0.0 }
 0x835   : > { %982 = vadd.xlane.f32.xlu1 %v981_v53 }
 0x8be   : > { %v983_v1 = vpop.xlane.xlu1 %982 }
 0x8bf   : > { %v984_v2 = vmul.f32 0.015625, %v983_v1 }
 0x8c1   : > { %v985_v3 = vadd.f32 1e-06, %v984_v2 }
 0x8c3   : > { %1634 = vrsqrt.f32 %v985_v3 }
 0x8d0   : > { %v1635_v4 = vpop.eup %1634 }
 0x8d1   : > { %v987_v5 = vmul.f32 %v1635_v4, %v979_v51 }
 0x8d3   : > { %v988_v6 = vpack.c.bf16 %v987_v5, %v987_v5 }
 0x8d5   : > { %1405 = vmatmul.mubr.msk.bf16.vlgmr.msra.gmra.mxu0 %vm429_vm0, %v988_v6 }
 0x995   : > { %v1086_v29 = vpop.f32.mrf.mxu0 }
 0x996   : > { %v1087_v30 = vadd.f32 %v1086_v29, %v1002_v27 }
 0x997   : > { %v1088_v31 = vpop.f32.mrf.mxu0 }
 0x998   : > { %v1095_v32 = vmul.f32 0.70710677, %v1087_v30  ;;  %v1089_v33 = vadd.f32 %v1088_v31, %v1006_v28  ;;  %v1093_v15 = vmul.f32 0.5, %v1087_v30 }
 0x999   : > { %v1090_v34 = vpop.f32.mrf.mxu0 }
 0x99a   : > { %1636 = verf.f32 %v1095_v32  ;;  %v1096_v35 = vmul.f32 0.70710677, %v1089_v33  ;;  %v1094_v40 = vmul.f32 0.5, %v1089_v33 }
 0x99b   : > { %v1091_v36 = vpop.f32.mrf.mxu0 }
 0x99c   : > { %1638 = verf.f32 %v1096_v35 }
 0x9a7   : > { %v1637_v37 = vpop.eup %1636 }
 0x9a8   : > { %v1099_v38 = vadd.f32 1.0, %v1637_v37 }
 0x9a9   : > { %v1639_v39 = vpop.eup %1638 }
 0x9aa   : > { %v1100_v41 = vadd.f32 1.0, %v1639_v39  ;;  %v1101_v42 = vmul.f32 %v1099_v38, %v1093_v15 }
 0x9ac   : > { %v1102_v43 = vmul.f32 %v1100_v41, %v1094_v40  ;;  %v1103_v45 = vpack.c.bf16 %v1101_v42, %v1101_v42 }
 0x9ae   : > { %v1104_v44 = vpack.c.bf16 %v1102_v43, %v1102_v43 }
 0x9b0   : > { %1272 = vmatprep.mubr.bf16.mxu1 %v1104_v44 }
 0x9b1   : > { %1273 = vmatmul.mubr.bf16.vlgmr.msra.gmra.mxu1 %v1103_v45 }
 0xa71   : > { %v1467_v47 = vpop.f32.mrf.mxu1 }
 0xa73   : > { %v1468_v49 = vpop.f32.mrf.mxu1 }
 0xa74   : > { %v1469_v50 = vadd.f32 %v1468_v49, %v1467_v47 }
 0xa75   : > { %v1470_v51 = vpop.f32.mrf.mxu1 }
 0xa76   : > { %v1275_v52 = vadd.f32 %v1469_v50, %v1406_v48 }
 0xa77   : > { %v1471_v53 = vpop.f32.mrf.mxu1 }
 0xa78   : > { %v1280_v54 = vadd.f32 %v1275_v52, %v1932_v46 }
 0xa7a   : > { %1281 = vst.msk [vmem:[%s417_s16] sm:$0xff] %vm429_vm0, %v1280_v54 }
 0xa7b   : > { %1653 = shalt.err (!%p1650_p3)
}
 0xa7c   : > { %s1654_s18 = scalar_lea.hbm %s1294_s20, 128  ;;  %s1658_s16 = scalar_lea.hbm %s2065_s12, 256 }
 0xa7d   : > { %p1655_p4 = scmp.ne.s32.totalorder %s1294_s20, %s1654_s18  ;;  %p1659_p9 = scmp.lt.s32.totalorder %s1294_s20, %s2065_s12 }
 0xa7e   : > { %p1660_p10 = scmp.lt.s32.totalorder %s1658_s16, %s1654_s18 }
 0xa7f   : > { %p1656_p7 = pnand %p1655_p4, %p1812_p5 }
 0xa80   : > { %p1661_p11 = por %p1660_p10, %p1659_p9 }
 0xa81   : > { %p1657_p8 = pneg %p1656_p7 }
 0xa83   : > { %p1662_p12 = pnand %p1661_p11, %p1657_p8 }
 0xa85   : > { %1665 = shalt.err (!%p1662_p12)
}
 0xa86   : > { %1537 = dma.vmem_to_hbm [thread:$0]  (%p1812_p5), %s1297_s17, 128, %s1294_s20, %s1283_s29  }
 0xa87 PF: > { %p1543_p13 = scmp.ge.s32.totalorder %s1700_s24, 2  ;;  %s1308_s1 = sand.u32 1, %s1688_s21  }
 0xa88   : > { %s1309_s15 = scalar_lea.sflag [#allocation3], %s1308_s1 }
 0xa89   : > { %p1540_p0 = pnand %p1543_p13, %p1816_p6 }
 0xa8b   : > { %p1541_p1 = pneg %p1540_p0 }
 0xa8d   : > { %1683 = dma.done.wait (%p1541_p1), %s1309_s15, 128  }
 0xa8e   : > { %1685 = vsyncadd (%p1541_p1), %s1309_s15, 4294967168  ;;  %p22_p2 = scmp.ge.s32.totalorder %s1799_s27, 4   ;;  %s2074_s21 = smov %s1692_s22 }
 0xa8f   : > { %s2075_s22 = smov %s1696_s23  ;;  %s2076_s23 = smov %s1810_s30 }
 0xa90   : > { %s2077_s24 = smov %s1799_s27  ;;  %24 = sbr.rel (!%p22_p2) target bundleno = 7 (0x7), region = 106 }
 0xa95   :  { %1314 = vsyncpa [#allocation3], 1 }
 0xa96   :  { %1316 = vsyncpa [#allocation3 + $0x1], 1 }

</bundles_post_ra>
